<compile_context>
chip_gen: v5e
topology: v5e:2x2
jax: 0.10.0
libtpu: 0.0.40
codegen_flags: <defaults>
</compile_context>

<pallas_src>
import functools

import jax
import jax.numpy as jnp
from jax.experimental import pallas as pl
from jax.experimental.pallas import tpu as pltpu


def _round_up(v, m):
    return -(-v // m) * m


def _tv_kernel(mask_ref, x_ref, out_ref, *, h, w, n, tb, use_xlu_roll, ragged):
    """One grid step: TV partial sums over a block of `tb` flattened slices.

    mask_ref: (2, h*w) f32 — row 0: h-diff column validity, row 1: w-diff.
    x_ref:    (tb, h*w)     — lane-dense block of flattened image slices.
    out_ref:  (1, 2, 128) f32 — [h partial, w partial], replicated on lanes.
    """
    hw = h * w
    x = x_ref[...].astype(jnp.float32)                     # (tb, hw)

    def neighbor(k):
        # y[:, i] = x[:, (i + k) % hw]; the wrapped entries are masked below.
        if use_xlu_roll:
            # Static XLU lane rotate: no relayout copies, off the VPU/vst slots.
            return pltpu.roll(x, shift=hw - k, axis=1)
        # Fallback for hw not a multiple of 128 (lowers to slice + concat).
        return jnp.roll(x, shift=-k, axis=1)

    h_ok = mask_ref[0:1, :]                                 # (1, hw) 0/1 f32
    w_ok = mask_ref[1:2, :]                                 # (1, hw) 0/1 f32

    if ragged:
        # The last block reads past the end of the (n, hw) array; padded rows
        # hold unspecified data, so *select* them to zero before reducing.
        row = jax.lax.broadcasted_iota(jnp.int32, (tb, hw), 0)
        valid_rows = (pl.program_id(0) * tb + row) < n
    else:
        valid_rows = None

    def masked_sq_sum(k, col_ok):
        d = (neighbor(k) - x) * col_ok
        sq = d * d
        if ragged:
            sq = jnp.where(valid_rows, sq, 0.0)
        return jnp.sum(sq)

    h_sum = masked_sq_sum(w, h_ok) if h > 1 else jnp.float32(0.0)
    w_sum = masked_sq_sum(1, w_ok) if w > 1 else jnp.float32(0.0)

    # Lane-dense (1, 2, 128) tile: sublane 0 = h partial, sublane 1 = w partial.
    sub = jax.lax.broadcasted_iota(jnp.int32, out_ref.shape, 1)
    out_ref[...] = jnp.where(sub == 0, h_sum, w_sum).astype(out_ref.dtype)


def tv_loss(x, tv_loss_weight=1.0, *, target_block_bytes=8 * 1024 * 1024):
    """Exact semantics of TVLoss.forward for NCHW input x (f32 scalar out)."""
    b, c, h, w = x.shape
    n = b * c
    hw = h * w
    xf = x.reshape(n, hw)            # lane-dense flat layout; free reshape

    # ---- block sizing from the padded (8,128)-tile VMEM footprint ----
    hw_pad = _round_up(hw, 128)
    in_row_bytes = hw_pad * x.dtype.itemsize     # one slice, input dtype
    f32_row_bytes = hw_pad * 4                   # one slice, f32 in-kernel

    def footprint(rows):
        r = _round_up(rows, 8)
        # double-buffered input block + ~6x block of f32/i32 temporaries.
        return 2 * r * in_row_bytes + 6 * r * f32_row_bytes

    try:
        vmem_cap = int(pltpu.get_tpu_info().vmem_capacity_bytes)
    except Exception:  # conservative default = v7x's 64 MiB per TensorCore
        vmem_cap = 64 * 1024 * 1024
    # ~48 MiB on v7x (64 MiB physical), ~96 MiB on v5e/v6e (128 MiB physical).
    vmem_budget = max(16 * 1024 * 1024,
                      min(vmem_cap * 3 // 4, vmem_cap - 12 * 1024 * 1024))

    per_row = 2 * in_row_bytes + 6 * f32_row_bytes
    rows_budget = max(8, (vmem_budget // per_row) // 8 * 8)
    rows_target = max(8, (target_block_bytes // f32_row_bytes) // 8 * 8)

    if n <= 8:
        tb = n                       # single block (tb == full dim, rule-safe)
    else:
        # tb must be a multiple of 8 (sublane tiling); keep >=2 blocks so both
        # v7x TensorCores get work, >=4 once n is large enough for pipelining.
        min_blocks = 2 if n < 32 else 4
        rows_blocks = max(8, (n // min_blocks) // 8 * 8)
        tb = max(8, min(rows_budget, rows_target, rows_blocks))
    num_blocks = pl.cdiv(n, tb)
    ragged = (n % tb) != 0
    # TODO(synk): slices so large that footprint(8) exceeds physical VMEM
    # (very large single images) need an H-tiled path with a one-row halo.

    vmem_limit = int(min(vmem_budget,
                         max(32 * 1024 * 1024,
                             footprint(tb) + 8 * 1024 * 1024)))

    # Host-built 0/1 column-validity masks (shared by every block, loaded once):
    lane = jnp.arange(hw, dtype=jnp.int32)
    h_ok = (lane < (h - 1) * w).astype(jnp.float32)      # not the last image row
    w_ok = (lane % w != (w - 1)).astype(jnp.float32)     # not the last image col
    masks = jnp.stack([h_ok, w_ok], axis=0)              # (2, hw) f32

    kernel = functools.partial(
        _tv_kernel, h=h, w=w, n=n, tb=tb,
        use_xlu_roll=(hw % 128 == 0), ragged=ragged)

    partials = pl.pallas_call(
        kernel,
        out_shape=jax.ShapeDtypeStruct((num_blocks, 2, 128), jnp.float32),
        grid_spec=pltpu.PrefetchScalarGridSpec(
            num_scalar_prefetch=0,
            grid=(num_blocks,),
            in_specs=[
                pl.BlockSpec((2, hw), lambda i: (0, 0)),      # resident masks
                pl.BlockSpec((tb, hw), lambda i: (i, 0)),     # data block
            ],
            out_specs=pl.BlockSpec((1, 2, 128), lambda i: (i, 0, 0)),
        ),
        compiler_params=pltpu.CompilerParams(
            dimension_semantics=("parallel",),
            vmem_limit_bytes=vmem_limit,
        ),
    )(masks, xf)

    h_tv = jnp.sum(partials[:, 0, 0])
    w_tv = jnp.sum(partials[:, 1, 0])

    count_h = c * (h - 1) * w        # tensor_size(x[:, :, 1:, :])
    count_w = c * h * (w - 1)        # tensor_size(x[:, :, :, 1:])
    # NOTE: h == 1 or w == 1 divides by zero — identical to the PyTorch module.
    return tv_loss_weight * 2.0 * (h_tv / count_h + w_tv / count_w) / b


def _tv_loss_ref(x, tv_loss_weight=1.0):
    b, c, h, w = x.shape
    count_h = c * (h - 1) * w
    count_w = c * h * (w - 1)
    h_tv = jnp.sum((x[:, :, 1:, :] - x[:, :, :-1, :]) ** 2)
    w_tv = jnp.sum((x[:, :, :, 1:] - x[:, :, :, :-1]) ** 2)
    return tv_loss_weight * 2.0 * (h_tv / count_h + w_tv / count_w) / b


if __name__ == "__main__":
    key0, key1 = jax.random.split(jax.random.PRNGKey(0))

    # Primary check: nominal small shape (single block, XLU-roll fast path).
    x = jax.random.normal(key0, (2, 4, 16, 16), dtype=jnp.float32)
    out = jax.block_until_ready(tv_loss(x, tv_loss_weight=1.0))
    ref = _tv_loss_ref(x, tv_loss_weight=1.0)
    assert jnp.allclose(out, ref, rtol=1e-4, atol=1e-5), (out, ref)

    # Secondary check: many slices -> multi-block "parallel" grid with a
    # ragged masked tail (n = 44, tb = 8 -> 6 blocks, last block 4 valid rows).
    x2 = jax.random.normal(key1, (2, 22, 16, 16), dtype=jnp.float32)
    out2 = jax.block_until_ready(tv_loss(x2, tv_loss_weight=0.5))
    ref2 = _tv_loss_ref(x2, tv_loss_weight=0.5)
    assert jnp.allclose(out2, ref2, rtol=1e-4, atol=1e-5), (out2, ref2)

    print("KERNEL_OK")
</pallas_src>

<mosaic_0001>
module attributes {stable_mosaic.version = 11 : i64} {
  func.func @_tv_kernel(%arg0: i32, %arg1: memref<2x256xf32, #tpu.memory_space<vmem>>, %arg2: memref<8x256xf32, #tpu.memory_space<vmem>>, %arg3: memref<1x2x128xf32, #tpu.memory_space<vmem>>) attributes {dimension_semantics = [#tpu.dimension_semantics<parallel>], iteration_bounds = array<i64: 1>, scalar_prefetch = 0 : i64, scratch_operands = 0 : i64, tpu.core_type = #tpu.core_type<tc>, window_params = [{pipeline_mode = #tpu.pipeline_mode<synchronous>, transform_indices = @transform_0, window_bounds = array<i64: 2, 256>}, {transform_indices = @transform_1, window_bounds = array<i64: 8, 256>}, {transform_indices = @transform_2, window_bounds = array<i64: 1, 2, 128>}]} {
    %c0 = arith.constant 0 : index
    %c0_0 = arith.constant 0 : index
    %0 = vector.load %arg2[%c0, %c0_0] : memref<8x256xf32, #tpu.memory_space<vmem>>, vector<8x256xf32>
    %c0_1 = arith.constant 0 : index
    %c0_2 = arith.constant 0 : index
    %1 = vector.load %arg1[%c0_1, %c0_2] : memref<2x256xf32, #tpu.memory_space<vmem>>, vector<1x256xf32>
    %c1 = arith.constant 1 : index
    %c0_3 = arith.constant 0 : index
    %2 = vector.load %arg1[%c1, %c0_3] : memref<2x256xf32, #tpu.memory_space<vmem>>, vector<1x256xf32>
    %c240_i32 = arith.constant 240 : i32
    %3 = tpu.dynamic_rotate %0 by %c240_i32 dim 1 : vector<8x256xf32>, i32 -> vector<8x256xf32>
    %4 = arith.subf %3, %0 : vector<8x256xf32>
    %5 = vector.broadcast %1 : vector<1x256xf32> to vector<8x256xf32>
    %6 = arith.mulf %4, %5 : vector<8x256xf32>
    %7 = arith.mulf %6, %6 : vector<8x256xf32>
    %8 = vector.shape_cast %7 : vector<8x256xf32> to vector<1x8x256xf32>
    %cst = arith.constant dense<0.000000e+00> : vector<1xf32>
    %9 = vector.multi_reduction <add>, %8, %cst [1, 2] : vector<1x8x256xf32> to vector<1xf32>
    %10 = vector.shape_cast %9 : vector<1xf32> to vector<1x1x1xf32>
    %11 = vector.extract %10[0, 0, 0] : f32 from vector<1x1x1xf32>
    %c255_i32 = arith.constant 255 : i32
    %12 = tpu.dynamic_rotate %0 by %c255_i32 dim 1 : vector<8x256xf32>, i32 -> vector<8x256xf32>
    %13 = arith.subf %12, %0 : vector<8x256xf32>
    %14 = vector.broadcast %2 : vector<1x256xf32> to vector<8x256xf32>
    %15 = arith.mulf %13, %14 : vector<8x256xf32>
    %16 = arith.mulf %15, %15 : vector<8x256xf32>
    %17 = vector.shape_cast %16 : vector<8x256xf32> to vector<1x8x256xf32>
    %cst_4 = arith.constant dense<0.000000e+00> : vector<1xf32>
    %18 = vector.multi_reduction <add>, %17, %cst_4 [1, 2] : vector<1x8x256xf32> to vector<1xf32>
    %19 = vector.shape_cast %18 : vector<1xf32> to vector<1x1x1xf32>
    %20 = vector.extract %19[0, 0, 0] : f32 from vector<1x1x1xf32>
    %21 = tpu.iota {dimensions = array<i32: 1>} : vector<1x2x128xi32>
    %c0_i32 = arith.constant 0 : i32
    %22 = vector.broadcast %c0_i32 : i32 to vector<1x2x128xi32>
    %23 = arith.cmpi eq, %21, %22 : vector<1x2x128xi32>
    %24 = vector.broadcast %11 : f32 to vector<1x2x128xf32>
    %25 = vector.broadcast %20 : f32 to vector<1x2x128xf32>
    %26 = arith.select %23, %24, %25 : vector<1x2x128xi1>, vector<1x2x128xf32>
    %c0_5 = arith.constant 0 : index
    %c0_6 = arith.constant 0 : index
    %c0_7 = arith.constant 0 : index
    %27 = vector.load %arg3[%c0_5, %c0_6, %c0_7] : memref<1x2x128xf32, #tpu.memory_space<vmem>>, vector<1x2x128xf32>
    tpu.vector_store %arg3[%c0_5, %c0_6, %c0_7], %26 {strides = array<i32>} : memref<1x2x128xf32, #tpu.memory_space<vmem>>, vector<1x2x128xf32>,
    return
  }
  func.func @transform_0(%arg0: i32) -> (i32, i32) {
    %c0_i32 = arith.constant 0 : i32
    %c0_i32_0 = arith.constant 0 : i32
    %c0_i32_1 = arith.constant 0 : i32
    return %c0_i32, %c0_i32_0 : i32, i32
  }
  func.func @transform_1(%arg0: i32) -> (i32, i32) {
    %c0_i32 = arith.constant 0 : i32
    %c0_i32_0 = arith.constant 0 : i32
    return %arg0, %c0_i32 : i32, i32
  }
  func.func @transform_2(%arg0: i32) -> (i32, i32, i32) {
    %c0_i32 = arith.constant 0 : i32
    %c0_i32_0 = arith.constant 0 : i32
    %c0_i32_1 = arith.constant 0 : i32
    return %arg0, %c0_i32, %c0_i32_0 : i32, i32, i32
  }
}

</mosaic_0001>

<bundles_post_ra>
// kernel: tpu_custom_call.1
= control target key start
LH: loop header
LB: loop body
LE: loop exit
PB: predicated region body
PF: predicated region fallthrough
CT: control target
= control target key end

     0   :  { %7 = vsyncpa [#allocation3], 0  ;;  %s244_s0 = inlined_call_operand.hbm [shape: f32[2,256], index: 0, kind: input, shape index: {}]   ;;  %s245_s1 = inlined_call_operand.hbm [shape: f32[8,256], index: 1, kind: input, shape index: {}]   ;;  %s246_s2 = inlined_call_operand.hbm [shape: f32[1,2,128], index: 2, kind: output, shape index: {}]  }
   0x1   :  { %8 = vsyncpa [#allocation6], 0 }
   0x2   :  { %9 = vsyncpa [#allocation4], 0  ;;  %s15_s11 = sshll.u32 %s244_s0, 4  ;;  %s215_s12 = smov [#allocation2]   ;;  %s16_s11 = int_to_ptr.hbm [resolvable:$true] %s15_s11 }
   0x3   :  { %s17_s13 = sshll.u32 %s215_s12, 4  ;;  %s26_s16 = sshll.u32 %s245_s1, 4  ;;  %s18_s13 = int_to_ptr.vmem [resolvable:$true] %s17_s13  ;;  %s27_s16 = int_to_ptr.hbm [resolvable:$true] %s26_s16 }
   0x4   :  { %20 = dma.hbm_to_vmem [thread:$0]  %s16_s11, 64, %s18_s13, [#allocation3]  }
   0x5   :  { %s216_s17 = smov [#allocation5]  }
   0x6   :  { %s28_s18 = sshll.u32 %s216_s17, 4  ;;  %s29_s18 = int_to_ptr.vmem [resolvable:$true] %s28_s18 }
   0x7   :  { %31 = dma.hbm_to_vmem [thread:$0]  %s27_s16, 256, %s29_s18, [#allocation6]  }
   0x8   :  { %209 = dma.done.wait [#allocation3], 64  }
   0x9   :  { %210 = vsyncadd [#allocation3], 4294967232 }
   0xa   :  { %211 = dma.done.wait [#allocation6], 256  }
   0xb   :  { %212 = vsyncadd [#allocation6], 4294967040  ;;  %v40_v0 = vld [vmem:[#allocation5] sm:$0xff]  ;;  %s217_s0 = smov 127   ;;  %s218_s19 = smov 112   ;;  %v41_v1 = vld [vmem:[#allocation5 + $0x8] sm:$0xff]  ;;  %v49_v2 = vlaneseq }
   0xc   :  { %75 = vrot.lane.b32.xlu1 %v40_v0, %s217_s0  ;;  %45 = vrot.lane.b32.xlu0 %v40_v0, %s218_s19  ;;  %v42_v6 = vld [vmem:[#allocation2] ss:$2 sm:$0x3]  ;;  %v44_v11 = vld [vmem:[#allocation2 + $0x1] ss:$2 sm:$0x3] }
   0xd   :  { %v50_v5 = vand.u32 127, %v49_v2  ;;  %v57_v9 = vperm.slane %v42_v6, 0  ;;  %v58_v10 = vperm.slane %v42_v6, 1  ;;  %v85_v18 = vperm.slane %v44_v11, 0  ;;  %s219_s1 = smov [#allocation7]   ;;  %s117_s24 = sshll.u32 %s246_s2, 4  ;;  %s118_s24 = int_to_ptr.hbm [resolvable:$true] %s117_s24 }
   0xe   :  { %v86_v19 = vperm.slane %v44_v11, 1  ;;  %v104_v46 = vshrl.u32 %v49_v2, 7  ;;  %s115_s20 = sshll.u32 %s219_s1, 4  ;;  %s116_s20 = int_to_ptr.vmem [resolvable:$true] %s115_s20 }
   0xf   :  { %vm79_vm0 = vcmp.lt.s32.totalorder %v50_v5, 127  ;;  %vm51_vm1 = vcmp.lt.s32.totalorder %v50_v5, 112 }
  0x10   :  { %vm105_vm2 = vcmp.eq.s32.totalorder %v104_v46, 0 }
  0x14   :  { %77 = vrot.lane.b32.xlu1 %v41_v1, %s217_s0  ;;  %47 = vrot.lane.b32.xlu0 %v41_v1, %s218_s19 }
  0x7e   :  { %v76_v3 = vpop.permute.xlu1 %75  ;;  %v46_v4 = vpop.permute.xlu0 %45 }
  0x86   :  { %v78_v7 = vpop.permute.xlu1 %77  ;;  %v48_v8 = vpop.permute.xlu0 %47 }
  0x87   :  { %v80_v12 = vsel %vm79_vm0, %v76_v3, %v78_v7  ;;  %v81_v13 = vsel %vm79_vm0, %v78_v7, %v76_v3  ;;  %v52_v14 = vsel %vm51_vm1, %v46_v4, %v48_v8  ;;  %v53_v15 = vsel %vm51_vm1, %v48_v8, %v46_v4 }
  0x88   :  { %v54_v16 = vsub.f32 %v52_v14, %v40_v0  ;;  %v55_v17 = vsub.f32 %v53_v15, %v41_v1  ;;  %v82_v20 = vsub.f32 %v80_v12, %v40_v0  ;;  %v83_v21 = vsub.f32 %v81_v13, %v41_v1 }
  0x8a   :  { %v61_v22 = vmul.f32 %v57_v9, %v54_v16  ;;  %v62_v23 = vmul.f32 %v58_v10, %v55_v17  ;;  %v89_v27 = vmul.f32 %v85_v18, %v82_v20  ;;  %v90_v28 = vmul.f32 %v86_v19, %v83_v21 }
  0x8c   :  { %v63_v24 = vmul.f32 %v61_v22, %v61_v22  ;;  %v64_v25 = vmul.f32 %v62_v23, %v62_v23  ;;  %v91_v29 = vmul.f32 %v89_v27, %v89_v27  ;;  %v92_v30 = vmul.f32 %v90_v28, %v90_v28 }
  0x8e   :  { %v65_v26 = vadd.f32 %v64_v25, %v63_v24  ;;  %v93_v31 = vadd.f32 %v92_v30, %v91_v29 }
  0x90   :  { %66 = vadd.xlane.f32.xlu2 %v65_v26 }
  0x98   :  { %94 = vadd.xlane.f32.xlu2 %v93_v31 }
 0x103   :  { %v67_v32 = vpop.xlane.xlu2 %66 }
 0x104   :  { %v68_v33 = vrot.slane %v67_v32, 4 }
 0x106   :  { %v69_v34 = vadd.f32 %v68_v33, %v67_v32 }
 0x108   :  { %v70_v35 = vrot.slane %v69_v34, 2 }
 0x10a   :  { %v71_v36 = vadd.f32 %v70_v35, %v69_v34 }
 0x10b   :  { %v95_v37 = vpop.xlane.xlu2 %94 }
 0x10c   :  { %v96_v38 = vrot.slane %v95_v37, 4  ;;  %v72_v39 = vrot.slane %v71_v36, 1 }
 0x10e   :  { %v97_v40 = vadd.f32 %v96_v38, %v95_v37  ;;  %v73_v41 = vadd.f32 %v72_v39, %v71_v36 }
 0x110   :  { %v98_v42 = vrot.slane %v97_v40, 2  ;;  %128 = vpush %v73_v41 }
 0x112   :  { %v99_v43 = vadd.f32 %v98_v42, %v97_v40 }
 0x114   :  { %v100_v44 = vrot.slane %v99_v43, 1 }
 0x116   :  { %v101_v45 = vadd.f32 %v100_v44, %v99_v43 }
 0x118   :  { %130 = vpush %v101_v45 }
 0x141   :  { %s129_s21 = spop %128 }
 0x142   :  { %v106_v47 = vstv %s129_s21 }
 0x149   :  { %s131_s25 = spop %130 }
 0x14a   :  { %v107_v48 = vstv %s131_s25 }
 0x14b   :  { %v108_v49 = vsel %vm105_vm2, %v106_v47, %v107_v48 }
 0x14c   :  { %109 = vst [vmem:[#allocation7] sm:$0x3] %v108_v49 }
 0x14d   :  { %120 = dma.vmem_to_hbm [thread:$0]  %s116_s20, 32, %s118_s24, [#allocation4]  }
 0x14e   :  { %213 = dma.done.wait [#allocation4], 32  }
 0x14f   :  { %214 = vsyncadd [#allocation4], 4294967264 }
 0x150   :  { %125 = vsyncpa [#allocation3], 1 }
 0x151   :  { %126 = vsyncpa [#allocation6], 1 }
 0x152   :  { %127 = vsyncpa [#allocation4], 1 }

</bundles_post_ra>
